<compile_context>
chip_gen: v6e
topology: v6e:2x2x1
jax: 0.10.0
libtpu: 0.0.40
codegen_flags: <defaults>
</compile_context>

<pallas_src>
import functools

import jax
import jax.numpy as jnp
import numpy as np
from jax.experimental import pallas as pl
from jax.experimental.pallas import tpu as pltpu


# ---------------------------------------------------------------------------
# Interpolation matrices (host side, PyTorch align_corners=False semantics)
# ---------------------------------------------------------------------------

def bilinear_matrix_1d(dst, src):
    """W (dst, src) s.t. out = W @ in == F.interpolate 1-D linear, align_corners=False."""
    scale = src / dst
    d = np.arange(dst, dtype=np.float64)
    s = (d + 0.5) * scale - 0.5
    s = np.maximum(s, 0.0)                      # PyTorch clamps negative src idx to 0
    i0 = np.minimum(np.floor(s).astype(np.int64), src - 1)
    i1 = np.minimum(i0 + 1, src - 1)
    l1 = s - i0
    l0 = 1.0 - l1
    W = np.zeros((dst, src), dtype=np.float64)
    np.add.at(W, (np.arange(dst), i0), l0)
    np.add.at(W, (np.arange(dst), i1), l1)
    return W.astype(np.float32)


def bilinear_kron_matrix(Ht, Wt, Hs, Ws, nb):
    """Dense 2-D interpolation matrix K^T (nb*Ps, nb*Pt):
       out(C, nb*Pt) = p(C, nb*Ps) @ K^T.  Block-diagonal over nb folded images."""
    Wy = bilinear_matrix_1d(Ht, Hs).astype(np.float64)          # (Ht, Hs)
    Wx = bilinear_matrix_1d(Wt, Ws).astype(np.float64)          # (Wt, Ws)
    KT = np.ascontiguousarray(np.kron(Wy, Wx).T)                # (Ps, Pt)
    if nb > 1:
        KT = np.kron(np.eye(nb, dtype=np.float64), KT)          # (nb*Ps, nb*Pt)
    return KT.astype(np.float32)


_KRON_MAX_ELEMS = 1 << 18   # use the dense kron path while Ps*Pt (per chunk) <= this


# ---------------------------------------------------------------------------
# FPNDecoder forward: one fused pallas_call
# ---------------------------------------------------------------------------

@functools.partial(jax.jit, static_argnames=("compute_dtype",))
def fpn_decoder_forward(params, res4, res3, res2, compute_dtype=jnp.bfloat16):
    """params: w4/w3/w2 as (out_dim, Cin) (== pytorch weight[:, :, 0, 0]),
               b4/b3/b2 as (out_dim, 1).
    res4/res3/res2: NCHW feature maps.  Returns NCHW output at res2 resolution.
    compute_dtype: dtype for activations/weights/interp on the DMA+MXU path
                   (default bf16); accumulation is always float32.  Use None
                   for the strict f32-parity path."""
    N, C4, H4, W4 = res4.shape
    _, C3, H3, W3 = res3.shape
    _, C2, H2, W2 = res2.shape
    Cout = params["w4"].shape[0]
    P4, P3, P2 = H4 * W4, H3 * W3, H2 * W2
    f32 = jnp.float32

    # ---- batch folding (only in the small-map regime where lanes would be <128) ----
    if N > 1 and P4 < 128:
        target = -(-128 // P4)                                  # ceil(128 / P4)
        divisors = [d for d in range(1, N + 1) if N % d == 0 and d >= target]
        NB = divisors[0] if divisors else N
    else:
        NB = 1
    G = N // NB
    NBP4, NBP3, NBP2 = NB * P4, NB * P3, NB * P2

    def fold(x, C, P):
        # (N, C, P) -> (G, C, NB*P); free reshape when NB == 1.
        x = x.reshape(G, NB, C, P)
        x = jnp.transpose(x, (0, 2, 1, 3))
        return x.reshape(G, C, NB * P)

    x4 = fold(res4.reshape(N, C4, P4), C4, P4)
    x3 = fold(res3.reshape(N, C3, P3), C3, P3)
    x2 = fold(res2.reshape(N, C2, P2), C2, P2)

    # ---- dtype handling (f32 accumulation always) ----
    w4, w3, w2 = params["w4"], params["w3"], params["w2"]
    if compute_dtype is not None:
        x4, x3, x2 = (a.astype(compute_dtype) for a in (x4, x3, x2))
        w4, w3, w2 = (w.astype(compute_dtype) for w in (w4, w3, w2))
    interp_dtype = f32 if compute_dtype is None else compute_dtype

    # Hoisted bias: bilinear rows sum to 1, so up(X + b) == up(X) + b per channel.
    bsum = (params["b4"] + params["b3"] + params["b2"]).astype(f32)

    # ---- upsample mode per stage (chosen at trace time) ----
    def stage_mode(Hs, Ws, Ht, Wt):
        if (Hs, Ws) == (Ht, Wt):
            return "none"                                       # identity upsample
        if NB > 1 or (Hs * Ws) * (Ht * Wt) <= _KRON_MAX_ELEMS:
            return "kron"                                       # one dense MXU matmul
        return "sep"                                            # separable fallback
    mode43 = stage_mode(H4, W4, H3, W3)
    mode32 = stage_mode(H3, W3, H2, W2)

    interp_inputs, interp_specs = [], []

    def add_stage(mode, Hs, Ws, Ht, Wt):
        if mode == "kron":
            kt = bilinear_kron_matrix(Ht, Wt, Hs, Ws, NB)
            interp_inputs.append(jnp.asarray(kt, dtype=interp_dtype))
            interp_specs.append(pl.BlockSpec(kt.shape, lambda g: (0, 0)))
        elif mode == "sep":
            wy = bilinear_matrix_1d(Ht, Hs)
            wxT = np.ascontiguousarray(bilinear_matrix_1d(Wt, Ws).T)
            interp_inputs.append(jnp.asarray(wy, dtype=interp_dtype))
            interp_inputs.append(jnp.asarray(wxT, dtype=interp_dtype))
            interp_specs.append(pl.BlockSpec(wy.shape, lambda g: (0, 0)))
            interp_specs.append(pl.BlockSpec(wxT.shape, lambda g: (0, 0)))
    add_stage(mode43, H4, W4, H3, W3)
    add_stage(mode32, H3, W3, H2, W2)
    n_interp = len(interp_inputs)

    # Running-map scratch only once it would exceed the vreg file comfortably.
    use_scratch = Cout * NBP2 * 4 > (512 * 1024)
    scratch_shapes = [pltpu.VMEM((Cout, NBP2), f32)] if use_scratch else []

    out_dtype = res2.dtype

    # ---- kernel body ----
    def sep_upsample(p, wy_ref, wxT_ref, Hs, Ws, Ht, Wt):
        # Width pass: one 2-D matmul (C*Hs, Ws) @ (Ws, Wt); height pass: one 2-D
        # matmul (Ht, Hs) @ (Hs, C*Wt).  (NB == 1 whenever this path is taken.)
        wy, wxT = wy_ref[...], wxT_ref[...]
        t = jnp.dot(p.reshape(Cout * Hs, Ws).astype(wxT.dtype), wxT,
                    preferred_element_type=f32)                          # (C*Hs, Wt)
        t = t.reshape(Cout, Hs, Wt).transpose(1, 0, 2).reshape(Hs, Cout * Wt)
        u = jnp.dot(wy, t.astype(wy.dtype), preferred_element_type=f32)  # (Ht, C*Wt)
        return u.reshape(Ht, Cout, Wt).transpose(1, 0, 2).reshape(Cout, Ht * Wt)

    def kernel(*refs):
        x4_ref, x3_ref, x2_ref, w4_ref, w3_ref, w2_ref, bsum_ref = refs[:7]
        interp_refs = refs[7:7 + n_interp]
        o_ref = refs[7 + n_interp]
        acc_ref = refs[8 + n_interp] if use_scratch else None

        def carry(p, width):
            # Optionally round-trip the running map through VMEM scratch to bound
            # vreg live ranges across the matmul chain.
            if acc_ref is None:
                return p
            acc_ref[:, :width] = p
            return acc_ref[:, :width]

        j = 0

        def upsample(p, mode, Hs, Ws, Ht, Wt):
            nonlocal j
            if mode == "none":
                return p
            if mode == "kron":
                kt = interp_refs[j][...]
                j += 1
                return jnp.dot(p.astype(kt.dtype), kt, preferred_element_type=f32)
            wy_ref, wxT_ref = interp_refs[j], interp_refs[j + 1]
            j += 2
            return sep_upsample(p, wy_ref, wxT_ref, Hs, Ws, Ht, Wt)

        # conv4 (1x1): (Cout, C4) @ (C4, NB*P4), f32 accumulation.
        p = jnp.dot(w4_ref[...], x4_ref[0], preferred_element_type=f32)
        p = carry(p, NBP4)

        # upsample to res3 size + conv3 lateral.
        p = upsample(p, mode43, H4, W4, H3, W3)
        p = p + jnp.dot(w3_ref[...], x3_ref[0], preferred_element_type=f32)
        p = carry(p, NBP3)

        # upsample to res2 size + conv2 lateral + hoisted (b4+b3+b2).
        p = upsample(p, mode32, H3, W3, H2, W2)
        p = p + jnp.dot(w2_ref[...], x2_ref[0], preferred_element_type=f32)
        p = p + bsum_ref[...]

        o_ref[0] = p.astype(o_ref.dtype)

    # ---- cost estimate / VMEM budget ----
    flops = 2 * Cout * (C4 * P4 + C3 * P3 + C2 * P2) * N
    if mode43 == "kron":
        flops += 2 * Cout * NBP4 * NBP3 * G
    elif mode43 == "sep":
        flops += 2 * Cout * (H4 * W4 * W3 + H4 * W3 * H3) * N
    if mode32 == "kron":
        flops += 2 * Cout * NBP3 * NBP2 * G
    elif mode32 == "sep":
        flops += 2 * Cout * (H3 * W3 * W2 + H3 * W2 * H2) * N

    in_item = x4.dtype.itemsize
    w_item = w4.dtype.itemsize
    out_item = np.dtype(out_dtype).itemsize
    interp_bytes = int(sum(int(a.size) * a.dtype.itemsize for a in interp_inputs))
    bytes_accessed = (
        (C4 * P4 + C3 * P3 + C2 * P2) * N * in_item
        + Cout * (C4 + C3 + C2) * w_item + Cout * 4
        + interp_bytes + N * Cout * P2 * out_item)
    cost = pl.CostEstimate(flops=int(flops), transcendentals=0,
                           bytes_accessed=int(bytes_accessed))

    block_bytes = (
        2 * (C4 * NBP4 + C3 * NBP3 + C2 * NBP2) * in_item       # double-buffered inputs
        + 2 * Cout * NBP2 * out_item                            # double-buffered output
        + Cout * (C4 + C3 + C2) * w_item + Cout * 4             # weights + bias
        + interp_bytes
        + (Cout * NBP2 * 4 if use_scratch else 0))
    vmem_limit = int(min(max(2 * block_bytes + (8 << 20), 32 << 20), 100 << 20))

    out_flat = pl.pallas_call(
        kernel,
        out_shape=jax.ShapeDtypeStruct((G, Cout, NBP2), out_dtype),
        grid=(G,),
        in_specs=[
            pl.BlockSpec((1, C4, NBP4), lambda g: (g, 0, 0)),
            pl.BlockSpec((1, C3, NBP3), lambda g: (g, 0, 0)),
            pl.BlockSpec((1, C2, NBP2), lambda g: (g, 0, 0)),
            pl.BlockSpec((Cout, C4), lambda g: (0, 0)),
            pl.BlockSpec((Cout, C3), lambda g: (0, 0)),
            pl.BlockSpec((Cout, C2), lambda g: (0, 0)),
            pl.BlockSpec((Cout, 1), lambda g: (0, 0)),
        ] + interp_specs,
        out_specs=pl.BlockSpec((1, Cout, NBP2), lambda g: (g, 0, 0)),
        scratch_shapes=scratch_shapes,
        compiler_params=pltpu.CompilerParams(
            dimension_semantics=("parallel",),
            vmem_limit_bytes=vmem_limit),
        cost_estimate=cost,
    )(x4, x3, x2, w4, w3, w2, bsum, *interp_inputs)

    # (G, Cout, NB*P2) -> NCHW; free when NB == 1.
    out = out_flat.reshape(G, Cout, NB, H2, W2)
    out = jnp.transpose(out, (0, 2, 1, 3, 4)).reshape(N, Cout, H2, W2)
    return out


# ---------------------------------------------------------------------------
# Plain-JAX reference (direct transcription of the PyTorch forward)
# ---------------------------------------------------------------------------

def fpn_decoder_reference(params, res4, res3, res2):
    hi = jax.lax.Precision.HIGHEST

    def conv(x, w, b):
        return jnp.einsum("oc,nchw->nohw", w, x, precision=hi) + b.reshape(1, -1, 1, 1)

    def upsample_add(x, y):
        _, _, Ht, Wt = y.shape
        _, _, Hs, Ws = x.shape
        if (Hs, Ws) != (Ht, Wt):
            Wy = jnp.asarray(bilinear_matrix_1d(Ht, Hs))
            Wx = jnp.asarray(bilinear_matrix_1d(Wt, Ws))
            x = jnp.einsum("Hh,Ww,nchw->ncHW", Wy, Wx, x, precision=hi)
        return x + y

    out = conv(res4, params["w4"], params["b4"])
    out = upsample_add(out, conv(res3, params["w3"], params["b3"]))
    out = upsample_add(out, conv(res2, params["w2"], params["b2"]))
    return out


# ---------------------------------------------------------------------------
# Main
# ---------------------------------------------------------------------------

if __name__ == "__main__":
    # Shapes consistent with FPNEncoder/FPNDecoder:
    #   res2: FEATS_DIMS[2]=128 ch @ stride 4, res3: FEATS_DIMS[3]=256 ch @ stride 8,
    #   res4: encoder out_dim (= decoder in_dim) @ stride 8 (layer4 has stride 1).
    N = 2
    in_dim = 64        # decoder in_dim (encoder out_dim)
    out_dim = 64       # decoder out_dim
    C3, C2 = 256, 128
    H2, W2 = 16, 16
    H3, W3 = 8, 8
    H4, W4 = 8, 8

    key = jax.random.PRNGKey(0)
    ks = jax.random.split(key, 9)
    res4 = jax.random.normal(ks[0], (N, in_dim, H4, W4), jnp.float32)
    res3 = jax.random.normal(ks[1], (N, C3, H3, W3), jnp.float32)
    res2 = jax.random.normal(ks[2], (N, C2, H2, W2), jnp.float32)

    params = {
        # stored as (Cout, Cin) == pytorch weight[:, :, 0, 0]
        "w4": 0.05 * jax.random.normal(ks[3], (out_dim, in_dim), jnp.float32),
        "b4": 0.05 * jax.random.normal(ks[4], (out_dim, 1), jnp.float32),
        "w3": 0.05 * jax.random.normal(ks[5], (out_dim, C3), jnp.float32),
        "b3": 0.05 * jax.random.normal(ks[6], (out_dim, 1), jnp.float32),
        "w2": 0.05 * jax.random.normal(ks[7], (out_dim, C2), jnp.float32),
        "b2": 0.05 * jax.random.normal(ks[8], (out_dim, 1), jnp.float32),
    }

    ref = jax.block_until_ready(fpn_decoder_reference(params, res4, res3, res2))

    # Strict-parity f32 path.
    out_f32 = jax.block_until_ready(
        fpn_decoder_forward(params, res4, res3, res2, compute_dtype=None))
    assert out_f32.shape == (N, out_dim, H2, W2), out_f32.shape
    assert np.allclose(np.asarray(out_f32), np.asarray(ref), rtol=1e-4, atol=1e-4)

    # Default bf16 HBM/MXU path (f32 accumulation) -- loose tolerance vs f32 reference.
    out_bf16 = jax.block_until_ready(fpn_decoder_forward(params, res4, res3, res2))
    assert out_bf16.shape == (N, out_dim, H2, W2)
    assert np.allclose(np.asarray(out_bf16), np.asarray(ref), rtol=1e-1, atol=1e-1)

    print("KERNEL_OK")
</pallas_src>

<mosaic_0001>
module attributes {stable_mosaic.version = 11 : i64} {
  func.func @kernel(%arg0: i32, %arg1: memref<1x64x128xf32, #tpu.memory_space<vmem>>, %arg2: memref<1x256x128xf32, #tpu.memory_space<vmem>>, %arg3: memref<1x128x512xf32, #tpu.memory_space<vmem>>, %arg4: memref<64x64xf32, #tpu.memory_space<vmem>>, %arg5: memref<64x256xf32, #tpu.memory_space<vmem>>, %arg6: memref<64x128xf32, #tpu.memory_space<vmem>>, %arg7: memref<64x1xf32, #tpu.memory_space<vmem>>, %arg8: memref<128x512xf32, #tpu.memory_space<vmem>>, %arg9: memref<1x64x512xf32, #tpu.memory_space<vmem>>) attributes {dimension_semantics = [#tpu.dimension_semantics<parallel>], iteration_bounds = array<i64: 1>, scalar_prefetch = 0 : i64, scratch_operands = 0 : i64, tpu.core_type = #tpu.core_type<tc>, window_params = [{transform_indices = @transform_0, window_bounds = array<i64: 1, 64, 128>}, {transform_indices = @transform_1, window_bounds = array<i64: 1, 256, 128>}, {transform_indices = @transform_2, window_bounds = array<i64: 1, 128, 512>}, {pipeline_mode = #tpu.pipeline_mode<synchronous>, transform_indices = @transform_3, window_bounds = array<i64: 64, 64>}, {pipeline_mode = #tpu.pipeline_mode<synchronous>, transform_indices = @transform_4, window_bounds = array<i64: 64, 256>}, {pipeline_mode = #tpu.pipeline_mode<synchronous>, transform_indices = @transform_5, window_bounds = array<i64: 64, 128>}, {pipeline_mode = #tpu.pipeline_mode<synchronous>, transform_indices = @transform_6, window_bounds = array<i64: 64, 1>}, {pipeline_mode = #tpu.pipeline_mode<synchronous>, transform_indices = @transform_7, window_bounds = array<i64: 128, 512>}, {transform_indices = @transform_8, window_bounds = array<i64: 1, 64, 512>}]} {
    %c0 = arith.constant 0 : index
    %c0_0 = arith.constant 0 : index
    %0 = vector.load %arg4[%c0, %c0_0] : memref<64x64xf32, #tpu.memory_space<vmem>>, vector<64x64xf32>
    %c0_1 = arith.constant 0 : index
    %c0_2 = arith.constant 0 : index
    %c0_3 = arith.constant 0 : index
    %1 = vector.load %arg1[%c0_1, %c0_2, %c0_3] : memref<1x64x128xf32, #tpu.memory_space<vmem>>, vector<1x64x128xf32>
    %2 = vector.shape_cast %1 : vector<1x64x128xf32> to vector<64x128xf32>
    %cst = arith.constant dense<0.000000e+00> : vector<64x128xf32>
    %3 = tpu.matmul %0, %2, %cst {dimension_numbers = #tpu.dot_dimension_numbers<[1], [0], [0], [1], [0, 0, 1, 1], [], []>} : vector<64x64xf32>, vector<64x128xf32>, vector<64x128xf32> -> vector<64x128xf32>
    %c0_4 = arith.constant 0 : index
    %c0_5 = arith.constant 0 : index
    %4 = vector.load %arg5[%c0_4, %c0_5] : memref<64x256xf32, #tpu.memory_space<vmem>>, vector<64x256xf32>
    %c0_6 = arith.constant 0 : index
    %c0_7 = arith.constant 0 : index
    %c0_8 = arith.constant 0 : index
    %5 = vector.load %arg2[%c0_6, %c0_7, %c0_8] : memref<1x256x128xf32, #tpu.memory_space<vmem>>, vector<1x256x128xf32>
    %6 = vector.shape_cast %5 : vector<1x256x128xf32> to vector<256x128xf32>
    %cst_9 = arith.constant dense<0.000000e+00> : vector<64x128xf32>
    %7 = tpu.matmul %4, %6, %cst_9 {dimension_numbers = #tpu.dot_dimension_numbers<[1], [0], [0], [1], [0, 0, 1, 1], [], []>} : vector<64x256xf32>, vector<256x128xf32>, vector<64x128xf32> -> vector<64x128xf32>
    %8 = arith.addf %3, %7 : vector<64x128xf32>
    %c0_10 = arith.constant 0 : index
    %c0_11 = arith.constant 0 : index
    %9 = vector.load %arg8[%c0_10, %c0_11] : memref<128x512xf32, #tpu.memory_space<vmem>>, vector<128x512xf32>
    %cst_12 = arith.constant dense<0.000000e+00> : vector<64x512xf32>
    %10 = tpu.matmul %8, %9, %cst_12 {dimension_numbers = #tpu.dot_dimension_numbers<[1], [0], [0], [1], [0, 0, 1, 1], [], []>} : vector<64x128xf32>, vector<128x512xf32>, vector<64x512xf32> -> vector<64x512xf32>
    %c0_13 = arith.constant 0 : index
    %c0_14 = arith.constant 0 : index
    %11 = vector.load %arg6[%c0_13, %c0_14] : memref<64x128xf32, #tpu.memory_space<vmem>>, vector<64x128xf32>
    %c0_15 = arith.constant 0 : index
    %c0_16 = arith.constant 0 : index
    %c0_17 = arith.constant 0 : index
    %12 = vector.load %arg3[%c0_15, %c0_16, %c0_17] : memref<1x128x512xf32, #tpu.memory_space<vmem>>, vector<1x128x512xf32>
    %13 = vector.shape_cast %12 : vector<1x128x512xf32> to vector<128x512xf32>
    %cst_18 = arith.constant dense<0.000000e+00> : vector<64x512xf32>
    %14 = tpu.matmul %11, %13, %cst_18 {dimension_numbers = #tpu.dot_dimension_numbers<[1], [0], [0], [1], [0, 0, 1, 1], [], []>} : vector<64x128xf32>, vector<128x512xf32>, vector<64x512xf32> -> vector<64x512xf32>
    %15 = arith.addf %10, %14 : vector<64x512xf32>
    %c0_19 = arith.constant 0 : index
    %c0_20 = arith.constant 0 : index
    %16 = vector.load %arg7[%c0_19, %c0_20] : memref<64x1xf32, #tpu.memory_space<vmem>>, vector<64x1xf32>
    %17 = vector.broadcast %16 : vector<64x1xf32> to vector<64x512xf32>
    %18 = arith.addf %15, %17 : vector<64x512xf32>
    %c0_21 = arith.constant 0 : index
    %c0_22 = arith.constant 0 : index
    %c0_23 = arith.constant 0 : index
    %19 = vector.load %arg9[%c0_21, %c0_22, %c0_23] : memref<1x64x512xf32, #tpu.memory_space<vmem>>, vector<1x64x512xf32>
    %20 = vector.shape_cast %19 : vector<1x64x512xf32> to vector<64x512xf32>
    %21 = vector.shape_cast %18 : vector<64x512xf32> to vector<1x64x512xf32>
    tpu.vector_store %arg9[%c0_21, %c0_22, %c0_23], %21 {strides = array<i32>} : memref<1x64x512xf32, #tpu.memory_space<vmem>>, vector<1x64x512xf32>,
    return
  }
  func.func @transform_0(%arg0: i32) -> (i32, i32, i32) {
    %c0_i32 = arith.constant 0 : i32
    %c0_i32_0 = arith.constant 0 : i32
    %c0_i32_1 = arith.constant 0 : i32
    return %arg0, %c0_i32, %c0_i32_0 : i32, i32, i32
  }
  func.func @transform_1(%arg0: i32) -> (i32, i32, i32) {
    %c0_i32 = arith.constant 0 : i32
    %c0_i32_0 = arith.constant 0 : i32
    %c0_i32_1 = arith.constant 0 : i32
    return %arg0, %c0_i32, %c0_i32_0 : i32, i32, i32
  }
  func.func @transform_2(%arg0: i32) -> (i32, i32, i32) {
    %c0_i32 = arith.constant 0 : i32
    %c0_i32_0 = arith.constant 0 : i32
    %c0_i32_1 = arith.constant 0 : i32
    return %arg0, %c0_i32, %c0_i32_0 : i32, i32, i32
  }
  func.func @transform_3(%arg0: i32) -> (i32, i32) {
    %c0_i32 = arith.constant 0 : i32
    %c0_i32_0 = arith.constant 0 : i32
    %c0_i32_1 = arith.constant 0 : i32
    return %c0_i32, %c0_i32_0 : i32, i32
  }
  func.func @transform_4(%arg0: i32) -> (i32, i32) {
    %c0_i32 = arith.constant 0 : i32
    %c0_i32_0 = arith.constant 0 : i32
    %c0_i32_1 = arith.constant 0 : i32
    return %c0_i32, %c0_i32_0 : i32, i32
  }
  func.func @transform_5(%arg0: i32) -> (i32, i32) {
    %c0_i32 = arith.constant 0 : i32
    %c0_i32_0 = arith.constant 0 : i32
    %c0_i32_1 = arith.constant 0 : i32
    return %c0_i32, %c0_i32_0 : i32, i32
  }
  func.func @transform_6(%arg0: i32) -> (i32, i32) {
    %c0_i32 = arith.constant 0 : i32
    %c0_i32_0 = arith.constant 0 : i32
    %c0_i32_1 = arith.constant 0 : i32
    return %c0_i32, %c0_i32_0 : i32, i32
  }
  func.func @transform_7(%arg0: i32) -> (i32, i32) {
    %c0_i32 = arith.constant 0 : i32
    %c0_i32_0 = arith.constant 0 : i32
    %c0_i32_1 = arith.constant 0 : i32
    return %c0_i32, %c0_i32_0 : i32, i32
  }
  func.func @transform_8(%arg0: i32) -> (i32, i32, i32) {
    %c0_i32 = arith.constant 0 : i32
    %c0_i32_0 = arith.constant 0 : i32
    %c0_i32_1 = arith.constant 0 : i32
    return %arg0, %c0_i32, %c0_i32_0 : i32, i32, i32
  }
}

</mosaic_0001>

<bundles_post_ra>
// kernel: fpn_decoder_forward.1
= control target key start
LH: loop header
LB: loop body
LE: loop exit
PB: predicated region body
PF: predicated region fallthrough
CT: control target
= control target key end

     0   :  { %vm198_vm0 = vcmask 523264   ;;  %s2174_s1 = inlined_call_operand.vmem [shape: f32[1,256,128], index: 1, kind: input, shape index: {}]   ;;  %s2175_s0 = inlined_call_operand.vmem [shape: f32[1,64,128], index: 0, kind: input, shape index: {}]   ;;  %s2176_s4 = inlined_call_operand.vmem [shape: f32[64,256], index: 4, kind: input, shape index: {}]   ;;  %s2177_s3 = inlined_call_operand.vmem [shape: f32[64,64], index: 3, kind: input, shape index: {}]   ;;  %s2178_s2 = inlined_call_operand.vmem [shape: f32[1,128,512], index: 2, kind: input, shape index: {}]   ;;  %s2179_s5 = inlined_call_operand.vmem [shape: f32[64,128], index: 5, kind: input, shape index: {}]   ;;  %s2180_s7 = inlined_call_operand.vmem [shape: f32[128,512], index: 7, kind: input, shape index: {}]   ;;  %s2181_s6 = inlined_call_operand.vmem [shape: f32[64,1], index: 6, kind: input, shape index: {}]   ;;  %s2182_s8 = inlined_call_operand.vmem [shape: f32[1,64,512], index: 8, kind: output, shape index: {}]  }
   0x1   :  { %v92_v0 = vld [vmem:[%s2174_s1 + $0xf8] sm:$0xff]  ;;  %v91_v2 = vld [vmem:[%s2174_s1 + $0xf0] sm:$0xff]  ;;  %v90_v4 = vld [vmem:[%s2174_s1 + $0xe8] sm:$0xff] }
   0x2   :  { %v76_v1 = vld [vmem:[%s2174_s1 + $0x78] sm:$0xff]  ;;  %1040 = vmatprep.subr.mxu0 %v92_v0  ;;  %v75_v3 = vld [vmem:[%s2174_s1 + $0x70] sm:$0xff]  ;;  %v74_v5 = vld [vmem:[%s2174_s1 + $0x68] sm:$0xff] }
   0x3   :  { %1041 = vmatpush3.msra.mxu0 %v76_v1  ;;  %v89_v6 = vld [vmem:[%s2174_s1 + $0xe0] sm:$0xff]  ;;  %v44_v8 = vld [vmem:[%s2175_s0 + $0x38] sm:$0xff]  ;;  %v43_v10 = vld [vmem:[%s2175_s0 + $0x30] sm:$0xff] }
   0x4   :  { %1042 = vmatprep.subr.mxu0 %v91_v2  ;;  %v73_v7 = vld [vmem:[%s2174_s1 + $0x60] sm:$0xff]  ;;  %v88_v9 = vld [vmem:[%s2174_s1 + $0xd8] sm:$0xff]  ;;  %1112 = vmatprep.subr.mxu1 %v44_v8  ;;  %v42_v12 = vld [vmem:[%s2175_s0 + $0x28] sm:$0xff] }
   0x5   :  { %1043 = vmatpush3.msra.mxu0 %v75_v3  ;;  %v72_v11 = vld [vmem:[%s2174_s1 + $0x58] sm:$0xff]  ;;  %1113 = vmatpush3.msra.mxu1 %v44_v8  ;;  %v87_v13 = vld [vmem:[%s2174_s1 + $0xd0] sm:$0xff]  ;;  %v41_v15 = vld [vmem:[%s2175_s0 + $0x20] sm:$0xff] }
   0x6   :  { %1044 = vmatprep.subr.mxu0 %v90_v4  ;;  %1114 = vmatprep.subr.mxu1 %v43_v10  ;;  %v71_v14 = vld [vmem:[%s2174_s1 + $0x50] sm:$0xff]  ;;  %v86_v16 = vld [vmem:[%s2174_s1 + $0xc8] sm:$0xff]  ;;  %v40_v18 = vld [vmem:[%s2175_s0 + $0x18] sm:$0xff] }
   0x7   :  { %1045 = vmatpush3.msra.mxu0 %v74_v5  ;;  %1115 = vmatpush3.msra.mxu1 %v43_v10  ;;  %v70_v17 = vld [vmem:[%s2174_s1 + $0x48] sm:$0xff]  ;;  %v85_v19 = vld [vmem:[%s2174_s1 + $0xc0] sm:$0xff]  ;;  %v39_v21 = vld [vmem:[%s2175_s0 + $0x10] sm:$0xff] }
   0x8   :  { %1046 = vmatprep.subr.mxu0 %v89_v6  ;;  %1116 = vmatprep.subr.mxu1 %v42_v12  ;;  %v69_v20 = vld [vmem:[%s2174_s1 + $0x40] sm:$0xff]  ;;  %v84_v22 = vld [vmem:[%s2174_s1 + $0xb8] sm:$0xff]  ;;  %v38_v24 = vld [vmem:[%s2175_s0 + $0x8] sm:$0xff] }
   0x9   :  { %1047 = vmatpush3.msra.mxu0 %v73_v7  ;;  %1117 = vmatpush3.msra.mxu1 %v42_v12  ;;  %v68_v23 = vld [vmem:[%s2174_s1 + $0x38] sm:$0xff]  ;;  %v83_v25 = vld [vmem:[%s2174_s1 + $0xb0] sm:$0xff]  ;;  %v37_v27 = vld [vmem:[%s2175_s0] sm:$0xff] }
   0xa   :  { %1048 = vmatprep.subr.mxu0 %v88_v9  ;;  %1118 = vmatprep.subr.mxu1 %v41_v15  ;;  %v67_v26 = vld [vmem:[%s2174_s1 + $0x30] sm:$0xff]  ;;  %v82_v28 = vld [vmem:[%s2174_s1 + $0xa8] sm:$0xff]  ;;  %v81_v31 = vld [vmem:[%s2174_s1 + $0xa0] sm:$0xff] }
   0xb   :  { %1049 = vmatpush3.msra.mxu0 %v72_v11  ;;  %1119 = vmatpush3.msra.mxu1 %v41_v15  ;;  %v46_v29 = vld [vmem:[%s2176_s4 + $0x8] sm:$0xff]  ;;  %v29_v32 = vld [vmem:[%s2177_s3] sm:$0xff]  ;;  %v80_v35 = vld [vmem:[%s2174_s1 + $0x98] sm:$0xff] }
   0xc   :  { %1050 = vmatprep.subr.mxu0 %v87_v13  ;;  %1120 = vmatprep.subr.mxu1 %v40_v18  ;;  %v66_v30 = vld [vmem:[%s2174_s1 + $0x28] sm:$0xff]  ;;  %v65_v33 = vld [vmem:[%s2174_s1 + $0x20] sm:$0xff]  ;;  %v31_v36 = vld [vmem:[%s2177_s3 + $0x10] sm:$0xff] }
   0xd   :  { %1051 = vmatpush3.msra.mxu0 %v71_v14  ;;  %1121 = vmatpush3.msra.mxu1 %v40_v18  ;;  %v30_v34 = vld [vmem:[%s2177_s3 + $0x8] sm:$0xff]  ;;  %v64_v37 = vld [vmem:[%s2174_s1 + $0x18] sm:$0xff]  ;;  %v79_v39 = vld [vmem:[%s2174_s1 + $0x90] sm:$0xff] }
   0xe   :  { %1052 = vmatprep.subr.mxu0 %v86_v16  ;;  %1122 = vmatprep.subr.mxu1 %v39_v21  ;;  %v461_v38 = vld [vmem:[%s2178_s2 + $0x1e8] sm:$0xff]  ;;  %v460_v40 = vld [vmem:[%s2178_s2 + $0x1e0] sm:$0xff]  ;;  %v63_v41 = vld [vmem:[%s2174_s1 + $0x10] sm:$0xff] }
   0xf   :  { %1053 = vmatpush3.msra.mxu0 %v70_v17  ;;  %1123 = vmatpush3.msra.mxu1 %v39_v21  ;;  %v32_v42 = vld [vmem:[%s2177_s3 + $0x18] sm:$0xff]  ;;  %v78_v43 = vld [vmem:[%s2174_s1 + $0x88] sm:$0xff]  ;;  %v33_v44 = vld [vmem:[%s2177_s3 + $0x20] sm:$0xff] }
  0x10   :  { %1054 = vmatprep.subr.mxu0 %v85_v19  ;;  %1124 = vmatprep.subr.mxu1 %v38_v24  ;;  %v62_v45 = vld [vmem:[%s2174_s1 + $0x8] sm:$0xff]  ;;  %v77_v47 = vld [vmem:[%s2174_s1 + $0x80] sm:$0xff]  ;;  %v35_v52 = vld [vmem:[%s2177_s3 + $0x30] sm:$0xff] }
  0x11   :  { %1055 = vmatpush3.msra.mxu0 %v69_v20  ;;  %1125 = vmatpush3.msra.mxu1 %v38_v24  ;;  %v457_v46 = vld [vmem:[%s2178_s2 + $0x1c8] sm:$0xff]  ;;  %v456_v48 = vld [vmem:[%s2178_s2 + $0x1c0] sm:$0xff]  ;;  %v48_v53 = vld [vmem:[%s2176_s4 + $0x18] sm:$0xff] }
  0x12   :  { %1056 = vmatprep.subr.mxu0 %v84_v22  ;;  %1126 = vmatprep.subr.mxu1 %v37_v27  ;;  %v61_v49 = vld [vmem:[%s2174_s1] sm:$0xff]  ;;  %v34_v50 = vld [vmem:[%s2177_s3 + $0x28] sm:$0xff]  ;;  %v463_v54 = vld [vmem:[%s2178_s2 + $0x1f8] sm:$0xff] }
  0x13   :  { %1057 = vmatpush3.msra.mxu0 %v68_v23  ;;  %157 = vmatprep.mubr.f32.mxu0 %v46_v29  ;;  %v45_v51 = vld [vmem:[%s2176_s4] sm:$0xff]  ;;  %v462_v55 = vld [vmem:[%s2178_s2 + $0x1f0] sm:$0xff]  ;;  %v453_v56 = vld [vmem:[%s2178_s2 + $0x1a8] sm:$0xff] }
  0x14   :  { %1058 = vmatprep.subr.mxu0 %v83_v25  ;;  %1127 = vmatpush3.msra.mxu1 %v37_v27  ;;  %v36_v57 = vld [vmem:[%s2177_s3 + $0x38] sm:$0xff]  ;;  %v47_v59 = vld [vmem:[%s2176_s4 + $0x10] sm:$0xff]  ;;  %v452_v60 = vld [vmem:[%s2178_s2 + $0x1a0] sm:$0xff] }
  0x15   :  { %1059 = vmatpush3.msra.mxu0 %v67_v26  ;;  %1128 = vmatprep.mubr.msk.f32.mxu1 %vm198_vm0, %v29_v32  ;;  %v459_v58 = vld [vmem:[%s2178_s2 + $0x1d8] sm:$0xff]  ;;  %v50_v61 = vld [vmem:[%s2176_s4 + $0x28] sm:$0xff]  ;;  %v458_v62 = vld [vmem:[%s2178_s2 + $0x1d0] sm:$0xff] }
  0x16   :  { %1060 = vmatprep.subr.mxu0 %v82_v28  ;;  %1129 = vmatmul.mubr.msk.f32.vlgmr.msra.gmra.mxu1 %vm198_vm0, %v30_v34  ;;  %v449_v63 = vld [vmem:[%s2178_s2 + $0x188] sm:$0xff]  ;;  %v455_v0 = vld [vmem:[%s2178_s2 + $0x1b8] sm:$0xff]  ;;  %v448_v1 = vld [vmem:[%s2178_s2 + $0x180] sm:$0xff] }
  0x17   :  { %1061 = vmatpush3.msra.mxu0 %v66_v30  ;;  %1131 = vmatprep.mubr.msk.f32.mxu1 %vm198_vm0, %v31_v36  ;;  %v454_v2 = vld [vmem:[%s2178_s2 + $0x1b0] sm:$0xff]  ;;  %v49_v3 = vld [vmem:[%s2176_s4 + $0x20] sm:$0xff]  ;;  %v445_v4 = vld [vmem:[%s2178_s2 + $0x168] sm:$0xff] }
  0x18   :  { %1062 = vmatprep.subr.mxu0 %v81_v31  ;;  %464 = vmatprep.subr.mxu1 %v461_v38  ;;  %v52_v5 = vld [vmem:[%s2176_s4 + $0x38] sm:$0xff]  ;;  %v444_v7 = vld [vmem:[%s2178_s2 + $0x160] sm:$0xff]  ;;  %v450_v8 = vld [vmem:[%s2178_s2 + $0x190] sm:$0xff] }
  0x19   :  { %1063 = vmatpush3.msra.mxu0 %v65_v33  ;;  %465 = vmatpush1.msra.mxu1 %v460_v40  ;;  %v451_v6 = vld [vmem:[%s2178_s2 + $0x198] sm:$0xff]  ;;  %v441_v9 = vld [vmem:[%s2178_s2 + $0x148] sm:$0xff]  ;;  %v51_v11 = vld [vmem:[%s2176_s4 + $0x30] sm:$0xff] }
  0x1a   :  { %1064 = vmatprep.subr.mxu0 %v80_v35  ;;  %1132 = vmatmul.mubr.msk.f32.gmra.mxu1 %vm198_vm0, %v32_v42  ;;  %v447_v10 = vld [vmem:[%s2178_s2 + $0x178] sm:$0xff]  ;;  %v440_v12 = vld [vmem:[%s2178_s2 + $0x140] sm:$0xff]  ;;  %v54_v13 = vld [vmem:[%s2176_s4 + $0x48] sm:$0xff] }
  0x1b   :  { %1065 = vmatpush3.msra.mxu0 %v64_v37  ;;  %1134 = vmatprep.mubr.msk.f32.mxu1 %vm198_vm0, %v33_v44  ;;  %v446_v14 = vld [vmem:[%s2178_s2 + $0x170] sm:$0xff]  ;;  %v437_v15 = vld [vmem:[%s2178_s2 + $0x128] sm:$0xff]  ;;  %v443_v16 = vld [vmem:[%s2178_s2 + $0x158] sm:$0xff] }
  0x1c   :  { %1066 = vmatprep.subr.mxu0 %v79_v39  ;;  %466 = vmatprep.subr.mxu1 %v457_v46  ;;  %v436_v17 = vld [vmem:[%s2178_s2 + $0x120] sm:$0xff]  ;;  %v442_v18 = vld [vmem:[%s2178_s2 + $0x150] sm:$0xff]  ;;  %v433_v20 = vld [vmem:[%s2178_s2 + $0x108] sm:$0xff] }
  0x1d   :  { %1067 = vmatpush3.msra.mxu0 %v63_v41  ;;  %467 = vmatpush1.msra.mxu1 %v456_v48  ;;  %v53_v19 = vld [vmem:[%s2176_s4 + $0x40] sm:$0xff]  ;;  %v56_v21 = vld [vmem:[%s2176_s4 + $0x58] sm:$0xff]  ;;  %v438_v24 = vld [vmem:[%s2178_s2 + $0x130] sm:$0xff] }
  0x1e   :  { %1068 = vmatprep.subr.mxu0 %v78_v43  ;;  %1135 = vmatmul.mubr.msk.f32.gmra.mxu1 %vm198_vm0, %v34_v50  ;;  %v439_v22 = vld [vmem:[%s2178_s2 + $0x138] sm:$0xff]  ;;  %v432_v23 = vld [vmem:[%s2178_s2 + $0x100] sm:$0xff]  ;;  %v429_v25 = vld [vmem:[%s2178_s2 + $0xe8] sm:$0xff] }
  0x1f   :  { %1069 = vmatpush3.msra.mxu0 %v62_v45  ;;  %1137 = vmatprep.mubr.msk.f32.mxu1 %vm198_vm0, %v35_v52  ;;  %v435_v26 = vld [vmem:[%s2178_s2 + $0x118] sm:$0xff]  ;;  %v55_v27 = vld [vmem:[%s2176_s4 + $0x50] sm:$0xff]  ;;  %v428_v28 = vld [vmem:[%s2178_s2 + $0xe0] sm:$0xff] }
  0x20   :  { %1070 = vmatprep.subr.mxu0 %v77_v47  ;;  %468 = vmatprep.subr.mxu1 %v453_v56  ;;  %v58_v29 = vld [vmem:[%s2176_s4 + $0x68] sm:$0xff]  ;;  %v434_v30 = vld [vmem:[%s2178_s2 + $0x110] sm:$0xff]  ;;  %v431_v32 = vld [vmem:[%s2178_s2 + $0xf8] sm:$0xff] }
  0x21   :  { %1071 = vmatpush3.msra.mxu0 %v61_v49  ;;  %469 = vmatpush1.msra.mxu1 %v452_v60  ;;  %v425_v31 = vld [vmem:[%s2178_s2 + $0xc8] sm:$0xff]  ;;  %v424_v33 = vld [vmem:[%s2178_s2 + $0xc0] sm:$0xff]  ;;  %v430_v34 = vld [vmem:[%s2178_s2 + $0xf0] sm:$0xff] }
  0x22   :  { %158 = vmatmul.mubr.f32.vlgmr.msra.gmra.mxu0 %v45_v51  ;;  %577 = vmatprep.subr.mxu0 %v463_v54  ;;  %v57_v35 = vld [vmem:[%s2176_s4 + $0x60] sm:$0xff]  ;;  %v421_v36 = vld [vmem:[%s2178_s2 + $0xa8] sm:$0xff]  ;;  %v60_v37 = vld [vmem:[%s2176_s4 + $0x78] sm:$0xff] }
  0x23   :  { %162 = vmatprep.mubr.f32.mxu0 %v48_v53  ;;  %578 = vmatpush1.msra.mxu0 %v462_v55  ;;  %v427_v38 = vld [vmem:[%s2178_s2 + $0xd8] sm:$0xff]  ;;  %v420_v39 = vld [vmem:[%s2178_s2 + $0xa0] sm:$0xff]  ;;  %v426_v40 = vld [vmem:[%s2178_s2 + $0xd0] sm:$0xff] }
  0x24   :  { %1138 = vmatmul.mubr.msk.f32.gmra.mxu1 %vm198_vm0, %v36_v57  ;;  %579 = vmatprep.subr.mxu0 %v459_v58  ;;  %v417_v41 = vld [vmem:[%s2178_s2 + $0x88] sm:$0xff]  ;;  %v423_v42 = vld [vmem:[%s2178_s2 + $0xb8] sm:$0xff]  ;;  %v59_v43 = vld [vmem:[%s2176_s4 + $0x70] sm:$0xff] }
  0x25   :  { %580 = vmatpush1.msra.mxu0 %v458_v62  ;;  %470 = vmatprep.subr.mxu1 %v449_v63  ;;  %v416_v44 = vld [vmem:[%s2178_s2 + $0x80] sm:$0xff]  ;;  %v422_v45 = vld [vmem:[%s2178_s2 + $0xb0] sm:$0xff]  ;;  %v413_v46 = vld [vmem:[%s2178_s2 + $0x68] sm:$0xff] }
  0x26   :  { %163 = vmatmul.mubr.f32.gmra.mxu0 %v47_v59  ;;  %581 = vmatprep.subr.mxu0 %v455_v0  ;;  %v419_v47 = vld [vmem:[%s2178_s2 + $0x98] sm:$0xff]  ;;  %v412_v48 = vld [vmem:[%s2178_s2 + $0x60] sm:$0xff]  ;;  %v418_v49 = vld [vmem:[%s2178_s2 + $0x90] sm:$0xff] }
  0x27   :  { %167 = vmatprep.mubr.f32.mxu0 %v50_v61  ;;  %471 = vmatpush1.msra.mxu1 %v448_v1  ;;  %v409_v50 = vld [vmem:[%s2178_s2 + $0x48] sm:$0xff]  ;;  %v415_v51 = vld [vmem:[%s2178_s2 + $0x78] sm:$0xff]  ;;  %v408_v52 = vld [vmem:[%s2178_s2 + $0x40] sm:$0xff]  ;;  %v1176_v1 = vmov 0.0  }
  0x28   :  { %582 = vmatpush1.msra.mxu0 %v454_v2  ;;  %472 = vmatprep.subr.mxu1 %v445_v4  ;;  %v414_v53 = vld [vmem:[%s2178_s2 + $0x70] sm:$0xff]  ;;  %v405_v54 = vld [vmem:[%s2178_s2 + $0x28] sm:$0xff]  ;;  %v411_v55 = vld [vmem:[%s2178_s2 + $0x58] sm:$0xff] }
  0x29   :  { %583 = vmatprep.subr.mxu0 %v451_v6  ;;  %473 = vmatpush1.msra.mxu1 %v444_v7  ;;  %v404_v56 = vld [vmem:[%s2178_s2 + $0x20] sm:$0xff]  ;;  %v410_v57 = vld [vmem:[%s2178_s2 + $0x50] sm:$0xff]  ;;  %v401_v58 = vld [vmem:[%s2178_s2 + $0x8] sm:$0xff] }
  0x2a   :  { %168 = vmatmul.mubr.f32.gmra.mxu0 %v49_v3  ;;  %474 = vmatprep.subr.mxu1 %v441_v9  ;;  %v407_v59 = vld [vmem:[%s2178_s2 + $0x38] sm:$0xff]  ;;  %v400_v60 = vld [vmem:[%s2178_s2] sm:$0xff]  ;;  %v406_v61 = vld [vmem:[%s2178_s2 + $0x30] sm:$0xff] }
  0x2b   :  { %172 = vmatprep.mubr.f32.mxu0 %v52_v5  ;;  %584 = vmatpush1.msra.mxu0 %v450_v8  ;;  %v392_v62 = vld [vmem:[%s2179_s5] sm:$0xff]  ;;  %v403_v63 = vld [vmem:[%s2178_s2 + $0x18] sm:$0xff]  ;;  %v402_v0 = vld [vmem:[%s2178_s2 + $0x10] sm:$0xff] }
  0x2c   :  { %585 = vmatprep.subr.mxu0 %v447_v10  ;;  %475 = vmatpush1.msra.mxu1 %v440_v12  ;;  %v389_v2 = vld [vmem:[%s2180_s7 + $0x1e8] sm:$0xff]  ;;  %v388_v3 = vld [vmem:[%s2180_s7 + $0x1e0] sm:$0xff]  ;;  %v1628_v4 = vld [vmem:[%s2180_s7 + $0x1f8] sm:$0xff] }
  0x2d   :  { %586 = vmatpush1.msra.mxu0 %v446_v14  ;;  %476 = vmatprep.subr.mxu1 %v437_v15  ;;  %v385_v5 = vld [vmem:[%s2180_s7 + $0x1c8] sm:$0xff]  ;;  %v1637_v6 = vld [vmem:[%s2180_s7 + $0x1f0] sm:$0xff]  ;;  %v384_v8 = vld [vmem:[%s2180_s7 + $0x1c0] sm:$0xff] }
  0x2e   :  { %173 = vmatmul.mubr.f32.gmra.mxu0 %v51_v11  ;;  %587 = vmatprep.subr.mxu0 %v443_v16  ;;  %v393_v7 = vld [vmem:[%s2179_s5 + $0x8] sm:$0xff]  ;;  %v1649_v9 = vld [vmem:[%s2180_s7 + $0x1d8] sm:$0xff]  ;;  %v1659_v11 = vld [vmem:[%s2180_s7 + $0x1d0] sm:$0xff] }
  0x2f   :  { %177 = vmatprep.mubr.f32.mxu0 %v54_v13  ;;  %477 = vmatpush1.msra.mxu1 %v436_v17  ;;  %v381_v10 = vld [vmem:[%s2180_s7 + $0x1a8] sm:$0xff]  ;;  %v380_v12 = vld [vmem:[%s2180_s7 + $0x1a0] sm:$0xff]  ;;  %v1668_v13 = vld [vmem:[%s2180_s7 + $0x1b8] sm:$0xff] }
  0x30   :  { %588 = vmatpush1.msra.mxu0 %v442_v18  ;;  %478 = vmatprep.subr.mxu1 %v433_v20  ;;  %v377_v14 = vld [vmem:[%s2180_s7 + $0x188] sm:$0xff]  ;;  %v1678_v15 = vld [vmem:[%s2180_s7 + $0x1b0] sm:$0xff]  ;;  %v376_v17 = vld [vmem:[%s2180_s7 + $0x180] sm:$0xff] }
  0x31   :  { %589 = vmatprep.subr.mxu0 %v439_v22  ;;  %479 = vmatpush1.msra.mxu1 %v432_v23  ;;  %v394_v16 = vld [vmem:[%s2179_s5 + $0x10] sm:$0xff]  ;;  %v1690_v18 = vld [vmem:[%s2180_s7 + $0x198] sm:$0xff]  ;;  %v369_v23 = vld [vmem:[%s2180_s7 + $0x148] sm:$0xff] }
  0x32   :  { %178 = vmatmul.mubr.f32.gmra.mxu0 %v53_v19  ;;  %480 = vmatprep.subr.mxu1 %v429_v25  ;;  %v373_v19 = vld [vmem:[%s2180_s7 + $0x168] sm:$0xff]  ;;  %v1700_v20 = vld [vmem:[%s2180_s7 + $0x190] sm:$0xff]  ;;  %v1709_v22 = vld [vmem:[%s2180_s7 + $0x178] sm:$0xff] }
  0x33   :  { %182 = vmatprep.mubr.f32.mxu0 %v56_v21  ;;  %590 = vmatpush1.msra.mxu0 %v438_v24  ;;  %v372_v21 = vld [vmem:[%s2180_s7 + $0x160] sm:$0xff]  ;;  %v1719_v24 = vld [vmem:[%s2180_s7 + $0x170] sm:$0xff]  ;;  %v395_v25 = vld [vmem:[%s2179_s5 + $0x18] sm:$0xff] }
  0x34   :  { %591 = vmatprep.subr.mxu0 %v435_v26  ;;  %481 = vmatpush1.msra.mxu1 %v428_v28  ;;  %v368_v26 = vld [vmem:[%s2180_s7 + $0x140] sm:$0xff]  ;;  %v365_v28 = vld [vmem:[%s2180_s7 + $0x128] sm:$0xff] }
  0x35   :  { %592 = vmatpush1.msra.mxu0 %v434_v30  ;;  %482 = vmatprep.subr.mxu1 %v425_v31  ;;  %v364_v30 = vld [vmem:[%s2180_s7 + $0x120] sm:$0xff]  ;;  %v1750_v31 = vld [vmem:[%s2180_s7 + $0x138] sm:$0xff] }
  0x36   :  { %183 = vmatmul.mubr.f32.gmra.mxu0 %v55_v27  ;;  %593 = vmatprep.subr.mxu0 %v431_v32  ;;  %v1731_v27 = vld [vmem:[%s2180_s7 + $0x158] sm:$0xff]  ;;  %v361_v32 = vld [vmem:[%s2180_s7 + $0x108] sm:$0xff] }
  0x37   :  { %187 = vmatprep.mubr.f32.mxu0 %v58_v29  ;;  %483 = vmatpush1.msra.mxu1 %v424_v33  ;;  %v1741_v29 = vld [vmem:[%s2180_s7 + $0x150] sm:$0xff] }
  0x38   :  { %594 = vmatpush1.msra.mxu0 %v430_v34  ;;  %484 = vmatprep.subr.mxu1 %v421_v36  ;;  %v1760_v33 = vld [vmem:[%s2180_s7 + $0x130] sm:$0xff]  ;;  %v396_v34 = vld [vmem:[%s2179_s5 + $0x20] sm:$0xff]  ;;  %v1772_v36 = vld [vmem:[%s2180_s7 + $0x118] sm:$0xff] }
  0x39   :  { %595 = vmatprep.subr.mxu0 %v427_v38  ;;  %485 = vmatpush1.msra.mxu1 %v420_v39  ;;  %v1782_v38 = vld [vmem:[%s2180_s7 + $0x110] sm:$0xff]  ;;  %v356_v39 = vld [vmem:[%s2180_s7 + $0xe0] sm:$0xff] }
  0x3a   :  { %188 = vmatmul.mubr.f32.gmra.mxu0 %v57_v35  ;;  %486 = vmatprep.subr.mxu1 %v417_v41  ;;  %v360_v35 = vld [vmem:[%s2180_s7 + $0x100] sm:$0xff]  ;;  %v353_v41 = vld [vmem:[%s2180_s7 + $0xc8] sm:$0xff] }
  0x3b   :  { %192 = vmatprep.mubr.f32.mxu0 %v60_v37  ;;  %596 = vmatpush1.msra.mxu0 %v426_v40  ;;  %v357_v37 = vld [vmem:[%s2180_s7 + $0xe8] sm:$0xff]  ;;  %v1791_v40 = vld [vmem:[%s2180_s7 + $0xf8] sm:$0xff] }
  0x3c   :  { %597 = vmatprep.subr.mxu0 %v423_v42  ;;  %487 = vmatpush1.msra.mxu1 %v416_v44  ;;  %v1801_v42 = vld [vmem:[%s2180_s7 + $0xf0] sm:$0xff]  ;;  %v352_v44 = vld [vmem:[%s2180_s7 + $0xc0] sm:$0xff] }
  0x3d   :  { %598 = vmatpush1.msra.mxu0 %v422_v45  ;;  %488 = vmatprep.subr.mxu1 %v413_v46  ;;  %v1813_v45 = vld [vmem:[%s2180_s7 + $0xd8] sm:$0xff]  ;;  %v349_v46 = vld [vmem:[%s2180_s7 + $0xa8] sm:$0xff] }
  0x3e   :  { %193 = vmatmul.mubr.f32.gmra.mxu0 %v59_v43  ;;  %599 = vmatprep.subr.mxu0 %v419_v47  ;;  %v397_v43 = vld [vmem:[%s2179_s5 + $0x28] sm:$0xff]  ;;  %v1823_v47 = vld [vmem:[%s2180_s7 + $0xd0] sm:$0xff] }
  0x3f   :  { %489 = vmatpush1.msra.mxu1 %v412_v48  ;;  %600 = vmatpush1.msra.mxu0 %v418_v49  ;;  %v348_v48 = vld [vmem:[%s2180_s7 + $0xa0] sm:$0xff]  ;;  %v1832_v49 = vld [vmem:[%s2180_s7 + $0xb8] sm:$0xff] }
  0x40   :  { %490 = vmatprep.subr.mxu1 %v409_v50  ;;  %601 = vmatprep.subr.mxu0 %v415_v51  ;;  %v345_v50 = vld [vmem:[%s2180_s7 + $0x88] sm:$0xff]  ;;  %v1842_v51 = vld [vmem:[%s2180_s7 + $0xb0] sm:$0xff] }
  0x41   :  { %491 = vmatpush1.msra.mxu1 %v408_v52  ;;  %602 = vmatpush1.msra.mxu0 %v414_v53  ;;  %v398_v52 = vld [vmem:[%s2179_s5 + $0x30] sm:$0xff]  ;;  %v344_v53 = vld [vmem:[%s2180_s7 + $0x80] sm:$0xff] }
  0x42   :  { %492 = vmatprep.subr.mxu1 %v405_v54  ;;  %603 = vmatprep.subr.mxu0 %v411_v55  ;;  %v1854_v54 = vld [vmem:[%s2180_s7 + $0x98] sm:$0xff]  ;;  %v341_v55 = vld [vmem:[%s2180_s7 + $0x68] sm:$0xff] }
  0x43   :  { %493 = vmatpush1.msra.mxu1 %v404_v56  ;;  %604 = vmatpush1.msra.mxu0 %v410_v57  ;;  %v1864_v56 = vld [vmem:[%s2180_s7 + $0x90] sm:$0xff]  ;;  %v340_v57 = vld [vmem:[%s2180_s7 + $0x60] sm:$0xff] }
  0x44   :  { %494 = vmatprep.subr.mxu1 %v401_v58  ;;  %605 = vmatprep.subr.mxu0 %v407_v59  ;;  %v1873_v58 = vld [vmem:[%s2180_s7 + $0x78] sm:$0xff]  ;;  %v337_v59 = vld [vmem:[%s2180_s7 + $0x48] sm:$0xff] }
  0x45   :  { %495 = vmatpush1.msra.mxu1 %v400_v60  ;;  %528 = vmatprep.mubr.f32.mxu1 %v1176_v1  ;;  %v1883_v60 = vld [vmem:[%s2180_s7 + $0x70] sm:$0xff] }
  0x46   :  { %606 = vmatpush1.msra.mxu0 %v406_v61  ;;  %529 = vmatmul.mubr.f32.vlgmr.msra.gmra.mxu1 %v392_v62  ;;  %v399_v61 = vld [vmem:[%s2179_s5 + $0x38] sm:$0xff] }
  0x47   :  { %607 = vmatprep.subr.mxu0 %v403_v63  ;;  %641 = vmatprep.mubr.f32.mxu0 %v1176_v1  ;;  %v1895_v63 = vld [vmem:[%s2180_s7 + $0x58] sm:$0xff] }
  0x48   :  { %608 = vmatpush1.msra.mxu0 %v402_v0  ;;  %690 = vmatprep.subr.mxu1 %v389_v2  ;;  %v333_v0 = vld [vmem:[%s2180_s7 + $0x28] sm:$0xff]  ;;  %v1905_v2 = vld [vmem:[%s2180_s7 + $0x50] sm:$0xff] }
  0x49   :  { %642 = vmatmul.mubr.f32.vlgmr.msra.gmra.mxu0 %v392_v62  ;;  %691 = vmatpush1.msra.mxu1 %v388_v3  ;;  %v336_v62 = vld [vmem:[%s2180_s7 + $0x40] sm:$0xff] }
  0x4a   :  { %803 = vmatprep.subr.mxu0 %v1628_v4  ;;  %534 = vmatprep.mubr.f32.mxu1 %v1176_v1  ;;  %v332_v3 = vld [vmem:[%s2180_s7 + $0x20] sm:$0xff] }
  0x4b   :  { %692 = vmatprep.subr.mxu1 %v385_v5  ;;  %804 = vmatpush1.msra.mxu0 %v1637_v6  ;;  %v1914_v5 = vld [vmem:[%s2180_s7 + $0x38] sm:$0xff] }
  0x4c   :  { %535 = vmatmul.mubr.f32.gmra.mxu1 %v393_v7  ;;  %805 = vmatprep.subr.mxu0 %v1649_v9 }
  0x4d   :  { %693 = vmatpush1.msra.mxu1 %v384_v8  ;;  %647 = vmatprep.mubr.f32.mxu0 %v1176_v1  ;;  %v1923_v8 = vld [vmem:[%s2180_s7 + $0x30] sm:$0xff] }
  0x4e   :  { %694 = vmatprep.subr.mxu1 %v381_v10  ;;  %806 = vmatpush1.msra.mxu0 %v1659_v11  ;;  %v328_v10 = vld [vmem:[%s2180_s7] sm:$0xff] }
  0x4f   :  { %695 = vmatpush1.msra.mxu1 %v380_v12  ;;  %648 = vmatmul.mubr.f32.gmra.mxu0 %v393_v7  ;;  %v329_v7 = vld [vmem:[%s2180_s7 + $0x8] sm:$0xff]  ;;  %v1932_v12 = vld [vmem:[%s2180_s7 + $0x18] sm:$0xff] }
  0x50   :  { %807 = vmatprep.subr.mxu0 %v1668_v13  ;;  %540 = vmatprep.mubr.f32.mxu1 %v1176_v1 }
  0x51   :  { %696 = vmatprep.subr.mxu1 %v377_v14  ;;  %808 = vmatpush1.msra.mxu0 %v1678_v15  ;;  %v1939_v14 = vld [vmem:[%s2180_s7 + $0x10] sm:$0xff] }
  0x52   :  { %541 = vmatmul.mubr.f32.gmra.mxu1 %v394_v16  ;;  %809 = vmatprep.subr.mxu0 %v1690_v18 }
  0x53   :  { %697 = vmatpush1.msra.mxu1 %v376_v17  ;;  %653 = vmatprep.mubr.f32.mxu0 %v1176_v1  ;;  %v916_v17 = vld [vmem:[%s2181_s6] sm:$0xff] }
  0x54   :  { %698 = vmatprep.subr.mxu1 %v373_v19  ;;  %810 = vmatpush1.msra.mxu0 %v1700_v20  ;;  %v918_v19 = vld [vmem:[%s2181_s6 + $0x10] sm:$0xff] }
  0x55   :  { %699 = vmatpush1.msra.mxu1 %v372_v21  ;;  %654 = vmatmul.mubr.f32.gmra.mxu0 %v394_v16  ;;  %v1177_v16 = vmov 0   ;;  %v919_v21 = vld [vmem:[%s2181_s6 + $0x18] sm:$0xff] }
  0x56   :  { %811 = vmatprep.subr.mxu0 %v1709_v22  ;;  %546 = vmatprep.mubr.f32.mxu1 %v1176_v1 }
  0x57   :  { %700 = vmatprep.subr.mxu1 %v369_v23  ;;  %812 = vmatpush1.msra.mxu0 %v1719_v24  ;;  %v920_v23 = vld [vmem:[%s2181_s6 + $0x20] sm:$0xff] }
  0x58   :  { %547 = vmatmul.mubr.f32.gmra.mxu1 %v395_v25  ;;  %813 = vmatprep.subr.mxu0 %v1731_v27 }
  0x59   :  { %701 = vmatpush1.msra.mxu1 %v368_v26  ;;  %659 = vmatprep.mubr.f32.mxu0 %v1176_v1  ;;  %v922_v26 = vld [vmem:[%s2181_s6 + $0x30] sm:$0xff] }
  0x5a   :  { %702 = vmatprep.subr.mxu1 %v365_v28  ;;  %814 = vmatpush1.msra.mxu0 %v1741_v29  ;;  %v923_v28 = vld [vmem:[%s2181_s6 + $0x38] sm:$0xff] }
  0x5b   :  { %703 = vmatpush1.msra.mxu1 %v364_v30  ;;  %660 = vmatmul.mubr.f32.gmra.mxu0 %v395_v25  ;;  %v921_v25 = vld [vmem:[%s2181_s6 + $0x28] sm:$0xff] }
  0x5c   :  { %815 = vmatprep.subr.mxu0 %v1750_v31  ;;  %552 = vmatprep.mubr.f32.mxu1 %v1176_v1 }
  0x5d   :  { %704 = vmatprep.subr.mxu1 %v361_v32  ;;  %816 = vmatpush1.msra.mxu0 %v1760_v33 }
  0x5e   :  { %553 = vmatmul.mubr.f32.gmra.mxu1 %v396_v34  ;;  %817 = vmatprep.subr.mxu0 %v1772_v36 }
  0x5f   :  { %705 = vmatpush1.msra.mxu1 %v360_v35  ;;  %665 = vmatprep.mubr.f32.mxu0 %v1176_v1 }
  0x60   :  { %706 = vmatprep.subr.mxu1 %v357_v37  ;;  %818 = vmatpush1.msra.mxu0 %v1782_v38 }
  0x61   :  { %707 = vmatpush1.msra.mxu1 %v356_v39  ;;  %666 = vmatmul.mubr.f32.gmra.mxu0 %v396_v34 }
  0x62   :  { %819 = vmatprep.subr.mxu0 %v1791_v40  ;;  %558 = vmatprep.mubr.f32.mxu1 %v1176_v1 }
  0x63   :  { %708 = vmatprep.subr.mxu1 %v353_v41  ;;  %820 = vmatpush1.msra.mxu0 %v1801_v42 }
  0x64   :  { %559 = vmatmul.mubr.f32.gmra.mxu1 %v397_v43  ;;  %821 = vmatprep.subr.mxu0 %v1813_v45 }
  0x65   :  { %709 = vmatpush1.msra.mxu1 %v352_v44  ;;  %671 = vmatprep.mubr.f32.mxu0 %v1176_v1 }
  0x66   :  { %710 = vmatprep.subr.mxu1 %v349_v46  ;;  %822 = vmatpush1.msra.mxu0 %v1823_v47 }
  0x67   :  { %711 = vmatpush1.msra.mxu1 %v348_v48  ;;  %672 = vmatmul.mubr.f32.gmra.mxu0 %v397_v43 }
  0x68   :  { %823 = vmatprep.subr.mxu0 %v1832_v49  ;;  %564 = vmatprep.mubr.f32.mxu1 %v1176_v1 }
  0x69   :  { %712 = vmatprep.subr.mxu1 %v345_v50  ;;  %824 = vmatpush1.msra.mxu0 %v1842_v51 }
  0x6a   :  { %565 = vmatmul.mubr.f32.gmra.mxu1 %v398_v52  ;;  %825 = vmatprep.subr.mxu0 %v1854_v54 }
  0x6b   :  { %713 = vmatpush1.msra.mxu1 %v344_v53  ;;  %677 = vmatprep.mubr.f32.mxu0 %v1176_v1 }
  0x6c   :  { %714 = vmatprep.subr.mxu1 %v341_v55  ;;  %826 = vmatpush1.msra.mxu0 %v1864_v56 }
  0x6d   :  { %715 = vmatpush1.msra.mxu1 %v340_v57  ;;  %678 = vmatmul.mubr.f32.gmra.mxu0 %v398_v52 }
  0x6e   :  { %827 = vmatprep.subr.mxu0 %v1873_v58  ;;  %570 = vmatprep.mubr.f32.mxu1 %v1176_v1 }
  0x6f   :  { %716 = vmatprep.subr.mxu1 %v337_v59  ;;  %828 = vmatpush1.msra.mxu0 %v1883_v60 }
  0x70   :  { %571 = vmatmul.mubr.f32.gmra.mxu1 %v399_v61  ;;  %829 = vmatprep.subr.mxu0 %v1895_v63 }
  0x71   :  { %717 = vmatpush1.msra.mxu1 %v336_v62  ;;  %683 = vmatprep.mubr.f32.mxu0 %v1176_v1 }
  0x72   :  { %718 = vmatprep.subr.mxu1 %v333_v0  ;;  %830 = vmatpush1.msra.mxu0 %v1905_v2 }
  0x73   :  { %719 = vmatpush1.msra.mxu1 %v332_v3  ;;  %684 = vmatmul.mubr.f32.gmra.mxu0 %v399_v61 }
  0x74   :  { %831 = vmatprep.subr.mxu0 %v1914_v5  ;;  %720 = vmatprep.subr.mxu1 %v329_v7 }
  0x75   :  { %832 = vmatpush1.msra.mxu0 %v1923_v8  ;;  %721 = vmatpush1.msra.mxu1 %v328_v10 }
  0x76   :  { %833 = vmatprep.subr.mxu0 %v1932_v12  ;;  %754 = vmatprep.mubr.f32.mxu1 %v1176_v1 }
  0x77   :  { %1140 = vmatprep.subr.mxu1 %v1628_v4  ;;  %834 = vmatpush1.msra.mxu0 %v1939_v14  ;;  %v917_v4 = vld [vmem:[%s2181_s6 + $0x8] sm:$0xff] }
  0x78   :  { %867 = vmatprep.mubr.f32.mxu0 %v1176_v1  ;;  %1174 = vset.pattern.permute.xlu0 %v1177_v16 }
  0x79   :  { %1175 = vset.pattern.permute.xlu1 %v1177_v16  ;;  %926 = vperm.xlu0 %1174, %v916_v17  }
  0x7a   :  { %936 = vperm.xlu1 %1175, %v918_v19  }
  0x7d   :  { %931 = vperm.xlu0 %1174, %v917_v4  }
  0x7e   :  { %941 = vperm.xlu1 %1175, %v919_v21  }
  0x81   :  { %946 = vperm.xlu0 %1174, %v920_v23  }
  0x82   :  { %951 = vperm.xlu1 %1175, %v921_v25  }
  0x85   :  { %956 = vperm.xlu0 %1174, %v922_v26  }
  0x86   :  { %961 = vperm.xlu1 %1175, %v923_v28  }
  0xd6   :  { %v1130_v32 = vpop.f32.mrf.mxu1 }
  0xd8   :  { %v289_v37 = vpop.f32.mrf.mxu1 }
  0xda   :  { %v1133_v48 = vpop.f32.mrf.mxu1 }
  0xdc   :  { %v299_v55 = vpop.f32.mrf.mxu1 }
  0xe2   :  { %v1072_v30 = vpop.f32.mrf.mxu0 }
  0xe4   :  { %v1073_v34 = vpop.f32.mrf.mxu0 }
  0xe5   :  { %v1074_v35 = vadd.f32 %v1073_v34, %v1072_v30 }
  0xe6   :  { %v1075_v39 = vpop.f32.mrf.mxu0 }
  0xe7   :  { %v290_v41 = vadd.f32 %v1074_v35, %v289_v37 }
  0xe8   :  { %v1076_v43 = vpop.f32.mrf.mxu0 }
  0xe9   :  { %v1077_v44 = vadd.f32 %v1076_v43, %v1075_v39  ;;  %755 = vmatmul.mubr.f32.vlgmr.msra.gmra.mxu1 %v290_v41  ;;  %868 = vmatmul.mubr.f32.vlgmr.msra.gmra.mxu0 %v290_v41 }
  0xea   :  { %1156 = vmatpush1.msra.mxu1 %v1637_v6  ;;  %v1078_v46 = vpop.f32.mrf.mxu0  ;;  %760 = vmatprep.mubr.f32.mxu1 %v1176_v1 }
  0xeb   :  { %v295_v50 = vadd.f32 %v1130_v32, %v1077_v44  ;;  %1141 = vmatprep.subr.mxu1 %v1649_v9  ;;  %873 = vmatprep.mubr.f32.mxu0 %v1176_v1 }
  0xec   :  { %1157 = vmatpush1.msra.mxu1 %v1659_v11  ;;  %v1079_v52 = vpop.f32.mrf.mxu0 }
  0xed   :  { %v1080_v53 = vadd.f32 %v1079_v52, %v1078_v46  ;;  %1142 = vmatprep.subr.mxu1 %v1668_v13  ;;  %761 = vmatmul.mubr.f32.gmra.mxu1 %v295_v50 }
  0xee   :  { %1158 = vmatpush1.msra.mxu1 %v1678_v15  ;;  %874 = vmatmul.mubr.f32.gmra.mxu0 %v295_v50  ;;  %v1081_v6 = vpop.f32.mrf.mxu0  ;;  %v1136_v15 = vpop.f32.mrf.mxu1 }
  0xef   :  { %v300_v57 = vadd.f32 %v1080_v53, %v299_v55  ;;  %1143 = vmatprep.subr.mxu1 %v1690_v18  ;;  %766 = vmatprep.mubr.f32.mxu1 %v1176_v1 }
  0xf0   :  { %1159 = vmatpush1.msra.mxu1 %v1700_v20  ;;  %v1082_v9 = vpop.f32.mrf.mxu0  ;;  %879 = vmatprep.mubr.f32.mxu0 %v1176_v1 }
  0xf1   :  { %v1083_v11 = vadd.f32 %v1082_v9, %v1081_v6  ;;  %1144 = vmatprep.subr.mxu1 %v1709_v22  ;;  %767 = vmatmul.mubr.f32.gmra.mxu1 %v300_v57  ;;  %v309_v22 = vpop.f32.mrf.mxu1 }
  0xf2   :  { %1160 = vmatpush1.msra.mxu1 %v1719_v24  ;;  %880 = vmatmul.mubr.f32.gmra.mxu0 %v300_v57  ;;  %v1084_v13 = vpop.f32.mrf.mxu0 }
  0xf3   :  { %v305_v59 = vadd.f32 %v1133_v48, %v1083_v11  ;;  %1145 = vmatprep.subr.mxu1 %v1731_v27  ;;  %772 = vmatprep.mubr.f32.mxu1 %v1176_v1 }
  0xf4   :  { %1161 = vmatpush1.msra.mxu1 %v1741_v29  ;;  %v1085_v18 = vpop.f32.mrf.mxu0  ;;  %885 = vmatprep.mubr.f32.mxu0 %v1176_v1  ;;  %v927_v44 = vpop.permute.xlu0 %926 }
  0xf5   :  { %v1086_v20 = vadd.f32 %v1085_v18, %v1084_v13  ;;  %1146 = vmatprep.subr.mxu1 %v1750_v31  ;;  %773 = vmatmul.mubr.f32.gmra.mxu1 %v305_v59 }
  0xf6   :  { %1162 = vmatpush1.msra.mxu1 %v1760_v33  ;;  %886 = vmatmul.mubr.f32.gmra.mxu0 %v305_v59  ;;  %v1087_v24 = vpop.f32.mrf.mxu0  ;;  %v1139_v33 = vpop.f32.mrf.mxu1 }
  0xf7   :  { %v310_v61 = vadd.f32 %v1086_v20, %v309_v22  ;;  %1147 = vmatprep.subr.mxu1 %v1772_v36  ;;  %778 = vmatprep.mubr.f32.mxu1 %v1176_v1 }
  0xf8   :  { %1163 = vmatpush1.msra.mxu1 %v1782_v38  ;;  %v1088_v27 = vpop.f32.mrf.mxu0  ;;  %891 = vmatprep.mubr.f32.mxu0 %v1176_v1 }
  0xf9   :  { %v1089_v29 = vadd.f32 %v1088_v27, %v1087_v24  ;;  %1148 = vmatprep.subr.mxu1 %v1791_v40  ;;  %779 = vmatmul.mubr.f32.gmra.mxu1 %v310_v61  ;;  %v319_v40 = vpop.f32.mrf.mxu1  ;;  %v937_v27 = vpop.permute.xlu1 %936 }
  0xfa   :  { %1164 = vmatpush1.msra.mxu1 %v1801_v42  ;;  %892 = vmatmul.mubr.f32.gmra.mxu0 %v310_v61  ;;  %v1090_v31 = vpop.f32.mrf.mxu0 }
  0xfb   :  { %v315_v62 = vadd.f32 %v1136_v15, %v1089_v29  ;;  %1149 = vmatprep.subr.mxu1 %v1813_v45  ;;  %784 = vmatprep.mubr.f32.mxu1 %v1176_v1  ;;  %v932_v15 = vpop.permute.xlu0 %931 }
  0xfc   :  { %1165 = vmatpush1.msra.mxu1 %v1823_v47  ;;  %v1091_v36 = vpop.f32.mrf.mxu0  ;;  %897 = vmatprep.mubr.f32.mxu0 %v1176_v1 }
  0xfd   :  { %v1092_v38 = vadd.f32 %v1091_v36, %v1090_v31  ;;  %1150 = vmatprep.subr.mxu1 %v1832_v49  ;;  %785 = vmatmul.mubr.f32.gmra.mxu1 %v315_v62 }
  0xfe   :  { %1166 = vmatpush1.msra.mxu1 %v1842_v51  ;;  %898 = vmatmul.mubr.f32.gmra.mxu0 %v315_v62  ;;  %v1093_v42 = vpop.f32.mrf.mxu0 }
  0xff   :  { %v320_v0 = vadd.f32 %v1092_v38, %v319_v40  ;;  %1151 = vmatprep.subr.mxu1 %v1854_v54  ;;  %790 = vmatprep.mubr.f32.mxu1 %v1176_v1 }
 0x100   :  { %1167 = vmatpush1.msra.mxu1 %v1864_v56  ;;  %v1094_v45 = vpop.f32.mrf.mxu0 }
 0x101   :  { %v1095_v47 = vadd.f32 %v1094_v45, %v1093_v42  ;;  %1152 = vmatprep.subr.mxu1 %v1873_v58  ;;  %791 = vmatmul.mubr.f32.gmra.mxu1 %v320_v0 }
 0x102   :  { %1168 = vmatpush1.msra.mxu1 %v1883_v60  ;;  %796 = vmatprep.mubr.f32.mxu1 %v1176_v1 }
 0x103   :  { %v325_v49 = vadd.f32 %v1139_v33, %v1095_v47  ;;  %1153 = vmatprep.subr.mxu1 %v1895_v63 }
 0x104   :  { %1169 = vmatpush1.msra.mxu1 %v1905_v2 }
 0x105   :  { %1154 = vmatprep.subr.mxu1 %v1914_v5  ;;  %797 = vmatmul.mubr.f32.gmra.mxu1 %v325_v49 }
 0x106   :  { %1170 = vmatpush1.msra.mxu1 %v1923_v8  ;;  %903 = vmatprep.mubr.f32.mxu1 %v1176_v1  ;;  %v530_v54 = vpop.f32.mrf.mxu1 }
 0x107   :  { %1155 = vmatprep.subr.mxu1 %v1932_v12 }
 0x108   :  { %1171 = vmatpush1.msra.mxu1 %v1939_v14  ;;  %v532_v58 = vpop.f32.mrf.mxu1 }
 0x109   :  { %904 = vmatmul.mubr.f32.vlgmr.msra.gmra.mxu1 %v320_v0  ;;  %v643_v51 = vpop.f32.mrf.mxu0 }
 0x10a   :  { %909 = vmatprep.mubr.f32.mxu1 %v1176_v1 }
 0x10b   :  { %v645_v56 = vpop.f32.mrf.mxu0 }
 0x10c   :  { %v536_v63 = vpop.f32.mrf.mxu1 }
 0x10d   :  { %910 = vmatmul.mubr.f32.gmra.mxu1 %v325_v49 }
 0x10e   :  { %v538_v3 = vpop.f32.mrf.mxu1 }
 0x10f   :  { %v649_v60 = vpop.f32.mrf.mxu0 }
 0x111   :  { %v651_v2 = vpop.f32.mrf.mxu0 }
 0x112   :  { %v542_v7 = vpop.f32.mrf.mxu1 }
 0x114   :  { %v544_v10 = vpop.f32.mrf.mxu1 }
 0x115   :  { %v655_v5 = vpop.f32.mrf.mxu0 }
 0x117   :  { %v2015_v8 = vpop.f32.mrf.mxu0 }
 0x118   :  { %v2019_v14 = vpop.f32.mrf.mxu1 }
 0x11a   :  { %v2023_v1 = vpop.f32.mrf.mxu1 }
 0x11b   :  { %v2017_v12 = vpop.f32.mrf.mxu0 }
 0x11d   :  { %v2021_v16 = vpop.f32.mrf.mxu0 }
 0x11e   :  { %v2027_v19 = vpop.f32.mrf.mxu1 }
 0x120   :  { %v2031_v21 = vpop.f32.mrf.mxu1 }
 0x121   :  { %v2025_v17 = vpop.f32.mrf.mxu0 }
 0x123   :  { %v2029_v4 = vpop.f32.mrf.mxu0 }
 0x124   :  { %v2035_v25 = vpop.f32.mrf.mxu1 }
 0x126   :  { %v2039_v28 = vpop.f32.mrf.mxu1 }
 0x127   :  { %v2033_v23 = vpop.f32.mrf.mxu0 }
 0x129   :  { %v2037_v26 = vpop.f32.mrf.mxu0 }
 0x12a   :  { %v2043_v32 = vpop.f32.mrf.mxu1 }
 0x12c   :  { %v2047_v35 = vpop.f32.mrf.mxu1 }
 0x12d   :  { %v2041_v30 = vpop.f32.mrf.mxu0 }
 0x12f   :  { %v2045_v34 = vpop.f32.mrf.mxu0 }
 0x130   :  { %v2051_v39 = vpop.f32.mrf.mxu1 }
 0x132   :  { %v2055_v43 = vpop.f32.mrf.mxu1 }
 0x133   :  { %v2049_v37 = vpop.f32.mrf.mxu0 }
 0x135   :  { %v2053_v41 = vpop.f32.mrf.mxu0 }
 0x1a9   :  { %v756_v46 = vpop.f32.mrf.mxu1  ;;  %v869_v48 = vpop.f32.mrf.mxu0 }
 0x1aa   :  { %v757_v50 = vadd.f32 %v756_v46, %v530_v54  ;;  %v870_v52 = vadd.f32 %v869_v48, %v643_v51 }
 0x1ab   :  { %v758_v53 = vpop.f32.mrf.mxu1  ;;  %v871_v55 = vpop.f32.mrf.mxu0 }
 0x1ac   :  { %v964_v6 = vadd.f32 %v927_v44, %v757_v50  ;;  %v966_v57 = vadd.f32 %v927_v44, %v870_v52  ;;  %v759_v9 = vadd.f32 %v758_v53, %v532_v58  ;;  %v872_v11 = vadd.f32 %v871_v55, %v645_v56  ;;  %v947_v55 = vpop.permute.xlu0 %946 }
 0x1ad   :  { %v762_v13 = vpop.f32.mrf.mxu1 }
 0x1ae   :  { %996 = vst [vmem:[%s2182_s8] sm:$0xff] %v964_v6  ;;  %998 = vst [vmem:[%s2182_s8 + $0x10] sm:$0xff] %v966_v57  ;;  %v965_v59 = vadd.f32 %v927_v44, %v759_v9  ;;  %v967_v18 = vadd.f32 %v927_v44, %v872_v11  ;;  %v763_v20 = vadd.f32 %v762_v13, %v536_v63  ;;  %v875_v22 = vpop.f32.mrf.mxu0 }
 0x1af   :  { %v876_v24 = vadd.f32 %v875_v22, %v649_v60  ;;  %v764_v61 = vpop.f32.mrf.mxu1 }
 0x1b0   :  { %997 = vst [vmem:[%s2182_s8 + $0x8] sm:$0xff] %v965_v59  ;;  %999 = vst [vmem:[%s2182_s8 + $0x18] sm:$0xff] %v967_v18  ;;  %v968_v29 = vadd.f32 %v932_v15, %v763_v20  ;;  %v765_v31 = vadd.f32 %v764_v61, %v538_v3  ;;  %v877_v33 = vpop.f32.mrf.mxu0 }
 0x1b1   :  { %v970_v62 = vadd.f32 %v932_v15, %v876_v24  ;;  %v878_v36 = vadd.f32 %v877_v33, %v651_v2  ;;  %v768_v38 = vpop.f32.mrf.mxu1  ;;  %v942_v2 = vpop.permute.xlu1 %941 }
 0x1b2   :  { %1000 = vst [vmem:[%s2182_s8 + $0x20] sm:$0xff] %v968_v29  ;;  %v969_v40 = vadd.f32 %v932_v15, %v765_v31  ;;  %v769_v42 = vadd.f32 %v768_v38, %v542_v7  ;;  %v881_v0 = vpop.f32.mrf.mxu0 }
 0x1b3   :  { %1002 = vst [vmem:[%s2182_s8 + $0x30] sm:$0xff] %v970_v62  ;;  %v971_v45 = vadd.f32 %v932_v15, %v878_v36  ;;  %v882_v47 = vadd.f32 %v881_v0, %v655_v5  ;;  %v770_v49 = vpop.f32.mrf.mxu1  ;;  %v957_v36 = vpop.permute.xlu0 %956 }
 0x1b4   :  { %1001 = vst [vmem:[%s2182_s8 + $0x28] sm:$0xff] %v969_v40  ;;  %v972_v51 = vadd.f32 %v937_v27, %v769_v42  ;;  %v771_v54 = vadd.f32 %v770_v49, %v544_v10  ;;  %v883_v56 = vpop.f32.mrf.mxu0 }
 0x1b5   :  { %1003 = vst [vmem:[%s2182_s8 + $0x38] sm:$0xff] %v971_v45  ;;  %v974_v58 = vadd.f32 %v937_v27, %v882_v47  ;;  %v884_v60 = vadd.f32 %v883_v56, %v2015_v8  ;;  %v774_v63 = vpop.f32.mrf.mxu1  ;;  %v952_v20 = vpop.permute.xlu1 %951 }
 0x1b6   :  { %1004 = vst [vmem:[%s2182_s8 + $0x40] sm:$0xff] %v972_v51  ;;  %v973_v3 = vadd.f32 %v937_v27, %v771_v54  ;;  %v775_v5 = vadd.f32 %v774_v63, %v2019_v14  ;;  %v887_v7 = vpop.f32.mrf.mxu0 }
 0x1b7   :  { %1006 = vst [vmem:[%s2182_s8 + $0x50] sm:$0xff] %v974_v58  ;;  %v975_v10 = vadd.f32 %v937_v27, %v884_v60  ;;  %v888_v44 = vadd.f32 %v887_v7, %v2017_v12  ;;  %v776_v46 = vpop.f32.mrf.mxu1 }
 0x1b8   :  { %1005 = vst [vmem:[%s2182_s8 + $0x48] sm:$0xff] %v973_v3  ;;  %v976_v8 = vadd.f32 %v942_v2, %v775_v5  ;;  %v777_v48 = vadd.f32 %v776_v46, %v2023_v1  ;;  %v889_v50 = vpop.f32.mrf.mxu0 }
 0x1b9   :  { %1007 = vst [vmem:[%s2182_s8 + $0x58] sm:$0xff] %v975_v10  ;;  %v978_v14 = vadd.f32 %v942_v2, %v888_v44  ;;  %v890_v52 = vadd.f32 %v889_v50, %v2021_v16  ;;  %v780_v53 = vpop.f32.mrf.mxu1  ;;  %v962_v47 = vpop.permute.xlu1 %961 }
 0x1ba   :  { %1008 = vst [vmem:[%s2182_s8 + $0x60] sm:$0xff] %v976_v8  ;;  %v977_v12 = vadd.f32 %v942_v2, %v777_v48  ;;  %v781_v6 = vadd.f32 %v780_v53, %v2027_v19  ;;  %v893_v57 = vpop.f32.mrf.mxu0 }
 0x1bb   :  { %1010 = vst [vmem:[%s2182_s8 + $0x70] sm:$0xff] %v978_v14  ;;  %v979_v1 = vadd.f32 %v942_v2, %v890_v52  ;;  %v894_v9 = vadd.f32 %v893_v57, %v2025_v17  ;;  %v782_v11 = vpop.f32.mrf.mxu1 }
 0x1bc   :  { %1009 = vst [vmem:[%s2182_s8 + $0x68] sm:$0xff] %v977_v12  ;;  %v980_v16 = vadd.f32 %v947_v55, %v781_v6  ;;  %v783_v13 = vadd.f32 %v782_v11, %v2031_v21  ;;  %v895_v15 = vpop.f32.mrf.mxu0 }
 0x1bd   :  { %1011 = vst [vmem:[%s2182_s8 + $0x78] sm:$0xff] %v979_v1  ;;  %v982_v19 = vadd.f32 %v947_v55, %v894_v9  ;;  %v896_v59 = vadd.f32 %v895_v15, %v2029_v4  ;;  %v786_v18 = vpop.f32.mrf.mxu1 }
 0x1be   :  { %1012 = vst [vmem:[%s2182_s8 + $0x80] sm:$0xff] %v980_v16  ;;  %v981_v17 = vadd.f32 %v947_v55, %v783_v13  ;;  %v787_v22 = vadd.f32 %v786_v18, %v2035_v25  ;;  %v899_v24 = vpop.f32.mrf.mxu0 }
 0x1bf   :  { %1014 = vst [vmem:[%s2182_s8 + $0x90] sm:$0xff] %v982_v19  ;;  %v983_v21 = vadd.f32 %v947_v55, %v896_v59  ;;  %v900_v61 = vadd.f32 %v899_v24, %v2033_v23  ;;  %v788_v27 = vpop.f32.mrf.mxu1 }
 0x1c0   :  { %1013 = vst [vmem:[%s2182_s8 + $0x88] sm:$0xff] %v981_v17  ;;  %v984_v4 = vadd.f32 %v952_v20, %v787_v22  ;;  %v789_v29 = vadd.f32 %v788_v27, %v2039_v28  ;;  %v901_v31 = vpop.f32.mrf.mxu0 }
 0x1c1   :  { %1015 = vst [vmem:[%s2182_s8 + $0x98] sm:$0xff] %v983_v21  ;;  %v986_v25 = vadd.f32 %v952_v20, %v900_v61  ;;  %v902_v33 = vadd.f32 %v901_v31, %v2037_v26  ;;  %v792_v62 = vpop.f32.mrf.mxu1 }
 0x1c2   :  { %1016 = vst [vmem:[%s2182_s8 + $0xa0] sm:$0xff] %v984_v4  ;;  %v985_v23 = vadd.f32 %v952_v20, %v789_v29  ;;  %v793_v38 = vadd.f32 %v792_v62, %v2043_v32 }
 0x1c3   :  { %1018 = vst [vmem:[%s2182_s8 + $0xb0] sm:$0xff] %v986_v25  ;;  %v987_v28 = vadd.f32 %v952_v20, %v902_v33  ;;  %v794_v40 = vpop.f32.mrf.mxu1 }
 0x1c4   :  { %1017 = vst [vmem:[%s2182_s8 + $0xa8] sm:$0xff] %v985_v23  ;;  %v988_v26 = vadd.f32 %v957_v36, %v793_v38  ;;  %v795_v42 = vadd.f32 %v794_v40, %v2047_v35 }
 0x1c5   :  { %1019 = vst [vmem:[%s2182_s8 + $0xb8] sm:$0xff] %v987_v28  ;;  %v798_v0 = vpop.f32.mrf.mxu1 }
 0x1c6   :  { %1020 = vst [vmem:[%s2182_s8 + $0xc0] sm:$0xff] %v988_v26  ;;  %v989_v32 = vadd.f32 %v957_v36, %v795_v42  ;;  %v799_v45 = vadd.f32 %v798_v0, %v2051_v39 }
 0x1c7   :  { %v800_v49 = vpop.f32.mrf.mxu1 }
 0x1c8   :  { %1021 = vst [vmem:[%s2182_s8 + $0xc8] sm:$0xff] %v989_v32  ;;  %v992_v51 = vadd.f32 %v962_v47, %v799_v45  ;;  %v801_v35 = vadd.f32 %v800_v49, %v2055_v43 }
 0x1c9   :  { %v905_v54 = vpop.f32.mrf.mxu1 }
 0x1ca   :  { %1024 = vst [vmem:[%s2182_s8 + $0xe0] sm:$0xff] %v992_v51  ;;  %v993_v56 = vadd.f32 %v962_v47, %v801_v35  ;;  %v906_v58 = vadd.f32 %v905_v54, %v2041_v30 }
 0x1cb   :  { %v907_v60 = vpop.f32.mrf.mxu1 }
 0x1cc   :  { %1025 = vst [vmem:[%s2182_s8 + $0xe8] sm:$0xff] %v993_v56  ;;  %v990_v39 = vadd.f32 %v957_v36, %v906_v58  ;;  %v908_v63 = vadd.f32 %v907_v60, %v2045_v34 }
 0x1cd   :  { %v911_v2 = vpop.f32.mrf.mxu1 }
 0x1ce   :  { %1022 = vst [vmem:[%s2182_s8 + $0xd0] sm:$0xff] %v990_v39  ;;  %v991_v43 = vadd.f32 %v957_v36, %v908_v63  ;;  %v912_v3 = vadd.f32 %v911_v2, %v2049_v37 }
 0x1cf   :  { %v913_v5 = vpop.f32.mrf.mxu1 }
 0x1d0   :  { %1023 = vst [vmem:[%s2182_s8 + $0xd8] sm:$0xff] %v991_v43  ;;  %v994_v30 = vadd.f32 %v962_v47, %v912_v3  ;;  %v914_v7 = vadd.f32 %v913_v5, %v2053_v41 }
 0x1d2   :  { %1026 = vst [vmem:[%s2182_s8 + $0xf0] sm:$0xff] %v994_v30  ;;  %v995_v34 = vadd.f32 %v962_v47, %v914_v7 }
 0x1d4   :  { %1027 = vst [vmem:[%s2182_s8 + $0xf8] sm:$0xff] %v995_v34 }

</bundles_post_ra>
